<compile_context>
chip_gen: v6e
topology: v6e:2x2x1
jax: 0.10.0
libtpu: 0.0.40
codegen_flags: <defaults>
</compile_context>

<pallas_src>
import functools
from typing import NamedTuple

import jax
import jax.numpy as jnp
import numpy as np
from jax.experimental import pallas as pl
from jax.experimental.pallas import tpu as pltpu


def _round_up(x, m):
    return (x + m - 1) // m * m


# ----------------------------------------------------------------------------
# ROIAlign (JAX glue, channel-last gather).
# TODO(synk): the data-dependent bilinear gather has no clean rectangular
# BlockSpec Pallas equivalent; at production shapes this (plus the NCHW->NHWC
# transpose) should move to a scalar-prefetch Pallas gather kernel or the
# backbone should stay NHWC upstream.  Output is emitted directly in bf16.
# ----------------------------------------------------------------------------
def roi_align_nhwc(features_nhwc, rois, *, output_size, spatial_scale,
                   sampling_ratio):
    """features_nhwc: [N, H, W, C] f32, rois: [R, 5] = (b, x1, y1, x2, y2)."""
    N, H, W, C = features_nhwc.shape
    P = output_size
    S = sampling_ratio
    PS = P * S

    def one_roi(roi):
        bidx = roi[0].astype(jnp.int32)
        x1 = roi[1] * spatial_scale
        y1 = roi[2] * spatial_scale
        x2 = roi[3] * spatial_scale
        y2 = roi[4] * spatial_scale
        roi_w = jnp.maximum(x2 - x1, 1.0)          # legacy aligned=False conv.
        roi_h = jnp.maximum(y2 - y1, 1.0)
        bin_w = roi_w / P
        bin_h = roi_h / P

        pidx = jnp.arange(P, dtype=jnp.float32)
        sidx = jnp.arange(S, dtype=jnp.float32)
        ys = (y1 + pidx[:, None] * bin_h + (sidx[None, :] + 0.5) * bin_h / S
              ).reshape(-1)                         # [PS]
        xs = (x1 + pidx[:, None] * bin_w + (sidx[None, :] + 0.5) * bin_w / S
              ).reshape(-1)                         # [PS]

        yy = ys[:, None]                            # [PS, 1]
        xx = xs[None, :]                            # [1, PS]
        # Reference CUDA kernel keeps samples with y in [-1, H], x in [-1, W].
        valid = (yy >= -1.0) & (yy <= H) & (xx >= -1.0) & (xx <= W)

        y = jnp.clip(yy, 0.0, H - 1.0)
        x = jnp.clip(xx, 0.0, W - 1.0)
        y0 = jnp.floor(y).astype(jnp.int32)
        x0 = jnp.floor(x).astype(jnp.int32)
        y1i = jnp.minimum(y0 + 1, H - 1)
        x1i = jnp.minimum(x0 + 1, W - 1)
        ly = y - y0.astype(jnp.float32)
        lx = x - x0.astype(jnp.float32)
        hy = 1.0 - ly
        hx = 1.0 - lx

        feat = features_nhwc[bidx]                  # [H, W, C]  channel-last

        def g(yi, xi):
            yi_b = jnp.broadcast_to(yi, (PS, PS))
            xi_b = jnp.broadcast_to(xi, (PS, PS))
            return feat[yi_b, xi_b]                 # [PS, PS, C] lane-dense C

        val = (g(y0, x0) * (hy * hx)[:, :, None]
               + g(y0, x1i) * (hy * lx)[:, :, None]
               + g(y1i, x0) * (ly * hx)[:, :, None]
               + g(y1i, x1i) * (ly * lx)[:, :, None])
        val = jnp.where(valid[:, :, None], val, 0.0)
        # average the S x S samples inside each of the P x P bins
        val = val.reshape(P, S, P, S, C).mean(axis=(1, 3))   # [P, P, C]
        return val

    pooled = jax.vmap(one_roi)(rois)                # [R, P, P, C]
    return pooled.astype(jnp.bfloat16)


# ----------------------------------------------------------------------------
# One-time weight packing (pad, cast to bf16, concatenate cls|bbox heads).
# ----------------------------------------------------------------------------
class BoxHeadDims(NamedTuple):
    K: int
    D: int
    NC: int
    NB: int
    K_pad: int
    D_pad: int
    NH_pad: int
    tk: int


def pack_box_head_params(params, *, tk=1792):
    """Pads/casts weights once at model-load time.  Weights are [in, out];
    fc6 rows follow the (P, P, C) flatten order used by the NHWC ROIAlign."""
    K, D = params["w6"].shape
    NC = params["wc"].shape[1]
    NB = params["wb"].shape[1]
    NH = NC + NB

    D_pad = _round_up(D, 128)
    NH_pad = _round_up(NH, 128)
    tk = min(tk, _round_up(K, 128))
    K_pad = _round_up(K, tk)

    bf = jnp.bfloat16
    w6_p = jnp.zeros((K_pad, D_pad), bf).at[:K, :D].set(params["w6"].astype(bf))
    b6_p = jnp.zeros((1, D_pad), jnp.float32).at[:, :D].set(
        params["b6"].reshape(1, D))
    w7_p = jnp.zeros((D_pad, D_pad), bf).at[:D, :D].set(params["w7"].astype(bf))
    b7_p = jnp.zeros((1, D_pad), jnp.float32).at[:, :D].set(
        params["b7"].reshape(1, D))
    wh = jnp.concatenate([params["wc"], params["wb"]], axis=1)        # [D, NH]
    bh = jnp.concatenate([params["bc"].reshape(1, NC),
                          params["bb"].reshape(1, NB)], axis=1)       # [1, NH]
    wh_p = jnp.zeros((D_pad, NH_pad), bf).at[:D, :NH].set(wh.astype(bf))
    bh_p = jnp.zeros((1, NH_pad), jnp.float32).at[:, :NH].set(bh)

    packed = {"w6": w6_p, "b6": b6_p, "w7": w7_p, "b7": b7_p,
              "wh": wh_p, "bh": bh_p}
    dims = BoxHeadDims(K=K, D=D, NC=NC, NB=NB, K_pad=K_pad, D_pad=D_pad,
                       NH_pad=NH_pad, tk=tk)
    return packed, dims


# ----------------------------------------------------------------------------
# Pallas kernel: tiled fc6 accumulation, then (ReLU+fc7+heads) finalize.
# ----------------------------------------------------------------------------
def box_head_kernel(x_ref, w6_ref, b6_ref, w7_ref, b7_ref, wh_ref, bh_ref,
                    feat_ref, heads_ref, acc_ref):
    k = pl.program_id(1)

    @pl.when(k == 0)
    def _():
        # Seed the accumulator with b6 (broadcast over rows) -> epilogue
        # needs no extra "+ b6" pass.
        acc_ref[...] = jnp.broadcast_to(b6_ref[...], acc_ref.shape)

    # fc6 partial product for this K tile (bf16 operands, f32 accumulation)
    acc_ref[...] += jnp.dot(x_ref[...], w6_ref[...],
                            preferred_element_type=jnp.float32)

    @pl.when(k == pl.num_programs(1) - 1)
    def _():
        h6 = jnp.maximum(acc_ref[...], 0.0).astype(jnp.bfloat16)  # [tr, D]
        h7 = jnp.dot(h6, w7_ref[...], preferred_element_type=jnp.float32)
        h7 = jnp.maximum(h7 + b7_ref[...], 0.0)                   # [tr, D] f32
        feat_ref[...] = h7.astype(feat_ref.dtype)                 # bf16 store
        # packed (cls_score | bbox_pred) head: one padded lane-dense matmul
        heads = jnp.dot(h7.astype(jnp.bfloat16), wh_ref[...],
                        preferred_element_type=jnp.float32)
        heads_ref[...] = (heads + bh_ref[...]).astype(heads_ref.dtype)


def box_head_mlp(pooled_flat, packed, dims, *, num_row_tiles=1):
    """pooled_flat: [R, K] (bf16).  Returns (features, class_logits, box_reg).

    num_row_tiles=1 -> w6 streamed from HBM exactly once (v5e/v6e);
    num_row_tiles=2 -> one row tile per TensorCore on v7x megacore.
    """
    R, K = pooled_flat.shape
    assert K == dims.K, (K, dims.K)
    tk, K_pad, D_pad, NH_pad = dims.tk, dims.K_pad, dims.D_pad, dims.NH_pad

    # Row tile covers all of R per tile (per core); multiple of 256 when large
    # so the 2x256^2 MXU (v6e/v7x) M-dimension is filled.
    R8 = _round_up(R, 8)
    tr = -(-R8 // num_row_tiles)                      # ceil div
    tr = _round_up(tr, 256) if tr >= 256 else _round_up(tr, 8)
    R_pad = tr * num_row_tiles

    bf = jnp.bfloat16
    x_p = jnp.zeros((R_pad, K_pad), bf).at[:R, :K].set(pooled_flat.astype(bf))

    grid = (num_row_tiles, K_pad // tk)

    # VMEM budget: actual usage + ~30% headroom, clamped to stay inside v7x's
    # 64 MiB physical VMEM and never below the 32 MiB scoped default.
    vmem_need = (2 * tr * tk * 2            # x tile, double-buffered bf16
                 + 2 * tk * D_pad * 2       # w6 tile, double-buffered bf16
                 + D_pad * D_pad * 2        # w7, single-buffered bf16
                 + D_pad * NH_pad * 2       # wh, single-buffered bf16
                 + (2 * D_pad + NH_pad) * 4  # biases
                 + tr * D_pad * 4           # f32 accumulator scratch
                 + 2 * tr * D_pad * 2       # feat out, double-buffered bf16
                 + 2 * tr * NH_pad * 4)     # heads out, double-buffered f32
    vmem_limit = max(32 << 20, min(int(vmem_need * 1.3) + (1 << 20), 60 << 20))

    flops = 2 * R_pad * (K_pad * D_pad + D_pad * D_pad + D_pad * NH_pad)
    bytes_accessed = (R_pad * K_pad * 2                      # x read once
                      + num_row_tiles * K_pad * D_pad * 2    # w6 per sweep
                      + D_pad * D_pad * 2 + D_pad * NH_pad * 2
                      + (2 * D_pad + NH_pad) * 4
                      + R_pad * D_pad * 2                    # feat write (bf16)
                      + R_pad * NH_pad * 4)                  # heads write (f32)
    cost = pl.CostEstimate(flops=flops, transcendentals=0,
                           bytes_accessed=bytes_accessed)

    single = pl.Buffered(1)   # grid-invariant operands: no double-buffer

    feat_p, heads_p = pl.pallas_call(
        box_head_kernel,
        out_shape=(jax.ShapeDtypeStruct((R_pad, D_pad), jnp.bfloat16),
                   jax.ShapeDtypeStruct((R_pad, NH_pad), jnp.float32)),
        grid_spec=pltpu.PrefetchScalarGridSpec(
            num_scalar_prefetch=0,
            grid=grid,
            in_specs=[
                pl.BlockSpec((tr, tk), lambda i, k: (i, k)),        # x tile
                pl.BlockSpec((tk, D_pad), lambda i, k: (k, 0)),     # w6 tile
                pl.BlockSpec((1, D_pad), lambda i, k: (0, 0),
                             pipeline_mode=single),                 # b6
                pl.BlockSpec((D_pad, D_pad), lambda i, k: (0, 0),
                             pipeline_mode=single),                 # w7 resident
                pl.BlockSpec((1, D_pad), lambda i, k: (0, 0),
                             pipeline_mode=single),                 # b7
                pl.BlockSpec((D_pad, NH_pad), lambda i, k: (0, 0),
                             pipeline_mode=single),                 # packed head
                pl.BlockSpec((1, NH_pad), lambda i, k: (0, 0),
                             pipeline_mode=single),                 # head bias
            ],
            out_specs=(
                pl.BlockSpec((tr, D_pad), lambda i, k: (i, 0)),     # features
                pl.BlockSpec((tr, NH_pad), lambda i, k: (i, 0)),    # heads slab
            ),
            scratch_shapes=[pltpu.VMEM((tr, D_pad), jnp.float32)],
        ),
        # Row axis "parallel" for megacore sharding on v7x (num_row_tiles=2
        # gives each TC one w6 sweep); K axis is the reduction -> "arbitrary".
        compiler_params=pltpu.CompilerParams(
            dimension_semantics=("parallel", "arbitrary"),
            vmem_limit_bytes=vmem_limit),
        cost_estimate=cost,
    )(x_p, packed["w6"], packed["b6"], packed["w7"], packed["b7"],
      packed["wh"], packed["bh"])

    x = feat_p[:R, :dims.D]
    class_logits = heads_p[:R, :dims.NC]
    box_regression = heads_p[:R, dims.NC:dims.NC + dims.NB]
    return x, class_logits, box_regression


# ----------------------------------------------------------------------------
# ROIBoxHead (inference forward)
# ----------------------------------------------------------------------------
def roi_box_head_forward(features, rois, packed, *, dims, pooler_resolution,
                         spatial_scale, sampling_ratio, num_row_tiles=1):
    """Mirrors ROIBoxHead.forward in eval mode.

    features: [N, C, H, W] (PyTorch NCHW).  Returns (x, result, losses, x, None)
    where `result` is the raw (class_logits, box_regression) pair.
    """
    features_nhwc = jnp.transpose(features, (0, 2, 3, 1))      # channel-last
    pooled = roi_align_nhwc(features_nhwc, rois,
                            output_size=pooler_resolution,
                            spatial_scale=spatial_scale,
                            sampling_ratio=sampling_ratio)     # [R, P, P, C] bf16
    R = pooled.shape[0]
    pooled_flat = pooled.reshape(R, -1)                        # [R, P*P*C] bf16
    x, class_logits, box_regression = box_head_mlp(
        pooled_flat, packed, dims, num_row_tiles=num_row_tiles)
    # TODO(synk): post_processor (box decoding + per-class NMS) and the
    # training-time loss_evaluator / DA subsampling have no clean Pallas
    # equivalent; inference path returns raw predictor outputs.
    result = (class_logits, box_regression)
    losses = {}
    return (x, result, losses, x, None)


# ----------------------------------------------------------------------------
# Deterministic parameter construction (FPN2MLP + FastRCNNPredictor shapes).
# Weights are stored pre-transposed as [in, out]; fc6 rows follow the
# (P, P, C) flatten order used by the NHWC ROIAlign above.
# ----------------------------------------------------------------------------
def make_params(key, in_dim, repr_dim, num_classes):
    ks = jax.random.split(key, 4)
    std = 0.01
    return {
        "w6": jax.random.normal(ks[0], (in_dim, repr_dim), jnp.float32) * std,
        "b6": jnp.zeros((repr_dim,), jnp.float32),
        "w7": jax.random.normal(ks[1], (repr_dim, repr_dim), jnp.float32) * std,
        "b7": jnp.zeros((repr_dim,), jnp.float32),
        "wc": jax.random.normal(ks[2], (repr_dim, num_classes), jnp.float32) * std,
        "bc": jnp.zeros((num_classes,), jnp.float32),
        "wb": jax.random.normal(ks[3], (repr_dim, num_classes * 4),
                                jnp.float32) * 0.001,
        "bb": jnp.zeros((num_classes * 4,), jnp.float32),
    }


def _reference_mlp(pooled_flat_f32, params):
    """Pure-JAX f32 reference of fc6->relu->fc7->relu->{cls,bbox}."""
    h6 = jnp.maximum(pooled_flat_f32 @ params["w6"] + params["b6"], 0.0)
    h7 = jnp.maximum(h6 @ params["w7"] + params["b7"], 0.0)
    return (h7,
            h7 @ params["wc"] + params["bc"],
            h7 @ params["wb"] + params["bb"])


if __name__ == "__main__":
    key = jax.random.PRNGKey(0)

    # Small config (chosen so the kernel grid is a real (2 row tiles, 2 K
    # steps) even at toy shapes; production uses num_row_tiles=1-2, tk=1792).
    N, C, H, W = 2, 16, 16, 16         # backbone feature map, NCHW
    P = 4                              # pooler resolution
    SAMPLING_RATIO = 2
    IMG_SIZE = 64.0
    SPATIAL_SCALE = H / IMG_SIZE       # 0.25
    REPR_DIM = 32                      # MLP head dim
    NUM_CLASSES = 5
    ROIS_PER_IMAGE = 8
    R = N * ROIS_PER_IMAGE

    k_feat, k_box, k_param = jax.random.split(key, 3)
    features = jax.random.normal(k_feat, (N, C, H, W), jnp.float32)

    # Proposals: [R, 5] = (batch_idx, x1, y1, x2, y2) in image coordinates
    kx, ky, kw, kh = jax.random.split(k_box, 4)
    x1 = jax.random.uniform(kx, (R,), minval=0.0, maxval=40.0)
    y1 = jax.random.uniform(ky, (R,), minval=0.0, maxval=40.0)
    bw = jax.random.uniform(kw, (R,), minval=8.0, maxval=24.0)
    bh = jax.random.uniform(kh, (R,), minval=8.0, maxval=24.0)
    batch_idx = jnp.repeat(jnp.arange(N, dtype=jnp.float32), ROIS_PER_IMAGE)
    rois = jnp.stack([batch_idx, x1, y1,
                      jnp.minimum(x1 + bw, IMG_SIZE - 1.0),
                      jnp.minimum(y1 + bh, IMG_SIZE - 1.0)], axis=1)

    params = make_params(k_param, in_dim=P * P * C, repr_dim=REPR_DIM,
                         num_classes=NUM_CLASSES)

    # One-time weight packing (model-load time, NOT per forward call).
    # tk=128 keeps 2 K steps at these toy shapes; production uses tk=1792.
    packed, dims = pack_box_head_params(params, tk=128)

    fwd = jax.jit(functools.partial(
        roi_box_head_forward,
        dims=dims,
        pooler_resolution=P,
        spatial_scale=SPATIAL_SCALE,
        sampling_ratio=SAMPLING_RATIO,
        num_row_tiles=2,               # exercises the multi-row-tile path
    ))
    x, (class_logits, box_regression), losses, da_feas, da_labels = fwd(
        features, rois, packed)
    jax.block_until_ready((x, class_logits, box_regression))

    assert x.shape == (R, REPR_DIM)
    assert class_logits.shape == (R, NUM_CLASSES)
    assert box_regression.shape == (R, NUM_CLASSES * 4)

    # Loose numeric check vs an f32 pure-JAX reference (bf16 operands and a
    # bf16 feature output -> small expected drift).
    feats_nhwc = jnp.transpose(features, (0, 2, 3, 1))
    pooled_ref = roi_align_nhwc(feats_nhwc, rois, output_size=P,
                                spatial_scale=SPATIAL_SCALE,
                                sampling_ratio=SAMPLING_RATIO)
    pooled_ref = pooled_ref.reshape(R, -1).astype(jnp.float32)
    x_ref, cls_ref, box_ref = _reference_mlp(pooled_ref, params)
    np.testing.assert_allclose(np.asarray(x.astype(jnp.float32)),
                               np.asarray(x_ref), rtol=5e-2, atol=5e-3)
    np.testing.assert_allclose(np.asarray(class_logits), np.asarray(cls_ref),
                               rtol=5e-2, atol=2e-3)
    np.testing.assert_allclose(np.asarray(box_regression), np.asarray(box_ref),
                               rtol=5e-2, atol=2e-3)

    print("KERNEL_OK")
</pallas_src>

<mosaic_0001>
module attributes {stable_mosaic.version = 11 : i64} {
  func.func @box_head_kernel(%arg0: i32, %arg1: i32, %arg2: memref<8x128xbf16, #tpu.memory_space<vmem>>, %arg3: memref<128x128xbf16, #tpu.memory_space<vmem>>, %arg4: memref<1x128xf32, #tpu.memory_space<vmem>>, %arg5: memref<128x128xbf16, #tpu.memory_space<vmem>>, %arg6: memref<1x128xf32, #tpu.memory_space<vmem>>, %arg7: memref<128x128xbf16, #tpu.memory_space<vmem>>, %arg8: memref<1x128xf32, #tpu.memory_space<vmem>>, %arg9: memref<8x128xbf16, #tpu.memory_space<vmem>>, %arg10: memref<8x128xf32, #tpu.memory_space<vmem>>, %arg11: memref<8x128xf32, #tpu.memory_space<vmem>>) attributes {dimension_semantics = [#tpu.dimension_semantics<parallel>, #tpu.dimension_semantics<arbitrary>], iteration_bounds = array<i64: 2, 2>, scalar_prefetch = 0 : i64, scratch_operands = 1 : i64, tpu.core_type = #tpu.core_type<tc>, window_params = [{transform_indices = @transform_0, window_bounds = array<i64: 8, 128>}, {transform_indices = @transform_1, window_bounds = array<i64: 128, 128>}, {pipeline_mode = #tpu.pipeline_mode<synchronous>, transform_indices = @transform_2, window_bounds = array<i64: 1, 128>}, {pipeline_mode = #tpu.pipeline_mode<synchronous>, transform_indices = @transform_3, window_bounds = array<i64: 128, 128>}, {pipeline_mode = #tpu.pipeline_mode<synchronous>, transform_indices = @transform_4, window_bounds = array<i64: 1, 128>}, {pipeline_mode = #tpu.pipeline_mode<synchronous>, transform_indices = @transform_5, window_bounds = array<i64: 128, 128>}, {pipeline_mode = #tpu.pipeline_mode<synchronous>, transform_indices = @transform_6, window_bounds = array<i64: 1, 128>}, {transform_indices = @transform_7, window_bounds = array<i64: 8, 128>}, {transform_indices = @transform_8, window_bounds = array<i64: 8, 128>}]} {
    %c0_i32 = arith.constant 0 : i32
    %0 = arith.cmpi eq, %arg1, %c0_i32 : i32
    %1 = arith.extui %0 : i1 to i32
    %c0_i32_0 = arith.constant 0 : i32
    %2 = arith.cmpi ne, %1, %c0_i32_0 : i32
    scf.if %2 {
      %c0_9 = arith.constant 0 : index
      %c0_10 = arith.constant 0 : index
      %12 = vector.load %arg4[%c0_9, %c0_10] : memref<1x128xf32, #tpu.memory_space<vmem>>, vector<1x128xf32>
      %13 = vector.shape_cast %12 : vector<1x128xf32> to vector<1x128xf32>
      %14 = vector.broadcast %13 : vector<1x128xf32> to vector<8x128xf32>
      %c0_11 = arith.constant 0 : index
      %c0_12 = arith.constant 0 : index
      %15 = vector.load %arg11[%c0_11, %c0_12] : memref<8x128xf32, #tpu.memory_space<vmem>>, vector<8x128xf32>
      tpu.vector_store %arg11[%c0_11, %c0_12], %14 {strides = array<i32>} : memref<8x128xf32, #tpu.memory_space<vmem>>, vector<8x128xf32>,
    } else {
    }
    %c0 = arith.constant 0 : index
    %c0_1 = arith.constant 0 : index
    %3 = vector.load %arg11[%c0, %c0_1] : memref<8x128xf32, #tpu.memory_space<vmem>>, vector<8x128xf32>
    %c0_2 = arith.constant 0 : index
    %c0_3 = arith.constant 0 : index
    %4 = vector.load %arg2[%c0_2, %c0_3] : memref<8x128xbf16, #tpu.memory_space<vmem>>, vector<8x128xbf16>
    %c0_4 = arith.constant 0 : index
    %c0_5 = arith.constant 0 : index
    %5 = vector.load %arg3[%c0_4, %c0_5] : memref<128x128xbf16, #tpu.memory_space<vmem>>, vector<128x128xbf16>
    %cst = arith.constant dense<0.000000e+00> : vector<8x128xf32>
    %6 = tpu.matmul %4, %5, %cst {dimension_numbers = #tpu.dot_dimension_numbers<[1], [0], [0], [1], [0, 0, 1, 1], [], []>} : vector<8x128xbf16>, vector<128x128xbf16>, vector<8x128xf32> -> vector<8x128xf32>
    %7 = arith.addf %3, %6 : vector<8x128xf32>
    %c0_6 = arith.constant 0 : index
    %c0_7 = arith.constant 0 : index
    %8 = vector.load %arg11[%c0_6, %c0_7] : memref<8x128xf32, #tpu.memory_space<vmem>>, vector<8x128xf32>
    tpu.vector_store %arg11[%c0_6, %c0_7], %7 {strides = array<i32>} : memref<8x128xf32, #tpu.memory_space<vmem>>, vector<8x128xf32>,
    %c1_i32 = arith.constant 1 : i32
    %9 = arith.cmpi eq, %arg1, %c1_i32 : i32
    %10 = arith.extui %9 : i1 to i32
    %c0_i32_8 = arith.constant 0 : i32
    %11 = arith.cmpi ne, %10, %c0_i32_8 : i32
    scf.if %11 {
      %c0_9 = arith.constant 0 : index
      %c0_10 = arith.constant 0 : index
      %12 = vector.load %arg11[%c0_9, %c0_10] : memref<8x128xf32, #tpu.memory_space<vmem>>, vector<8x128xf32>
      %cst_11 = arith.constant 0.000000e+00 : f32
      %13 = vector.broadcast %cst_11 : f32 to vector<8x128xf32>
      %14 = arith.maximumf %12, %13 : vector<8x128xf32>
      %15 = arith.truncf %14 : vector<8x128xf32> to vector<8x128xbf16>
      %c0_12 = arith.constant 0 : index
      %c0_13 = arith.constant 0 : index
      %16 = vector.load %arg5[%c0_12, %c0_13] : memref<128x128xbf16, #tpu.memory_space<vmem>>, vector<128x128xbf16>
      %cst_14 = arith.constant dense<0.000000e+00> : vector<8x128xf32>
      %17 = tpu.matmul %15, %16, %cst_14 {dimension_numbers = #tpu.dot_dimension_numbers<[1], [0], [0], [1], [0, 0, 1, 1], [], []>} : vector<8x128xbf16>, vector<128x128xbf16>, vector<8x128xf32> -> vector<8x128xf32>
      %c0_15 = arith.constant 0 : index
      %c0_16 = arith.constant 0 : index
      %18 = vector.load %arg6[%c0_15, %c0_16] : memref<1x128xf32, #tpu.memory_space<vmem>>, vector<1x128xf32>
      %19 = vector.broadcast %18 : vector<1x128xf32> to vector<8x128xf32>
      %20 = arith.addf %17, %19 : vector<8x128xf32>
      %cst_17 = arith.constant 0.000000e+00 : f32
      %21 = vector.broadcast %cst_17 : f32 to vector<8x128xf32>
      %22 = arith.maximumf %20, %21 : vector<8x128xf32>
      %23 = arith.truncf %22 : vector<8x128xf32> to vector<8x128xbf16>
      %c0_18 = arith.constant 0 : index
      %c0_19 = arith.constant 0 : index
      %24 = vector.load %arg9[%c0_18, %c0_19] : memref<8x128xbf16, #tpu.memory_space<vmem>>, vector<8x128xbf16>
      tpu.vector_store %arg9[%c0_18, %c0_19], %23 {strides = array<i32>} : memref<8x128xbf16, #tpu.memory_space<vmem>>, vector<8x128xbf16>,
      %25 = arith.truncf %22 : vector<8x128xf32> to vector<8x128xbf16>
      %c0_20 = arith.constant 0 : index
      %c0_21 = arith.constant 0 : index
      %26 = vector.load %arg7[%c0_20, %c0_21] : memref<128x128xbf16, #tpu.memory_space<vmem>>, vector<128x128xbf16>
      %cst_22 = arith.constant dense<0.000000e+00> : vector<8x128xf32>
      %27 = tpu.matmul %25, %26, %cst_22 {dimension_numbers = #tpu.dot_dimension_numbers<[1], [0], [0], [1], [0, 0, 1, 1], [], []>} : vector<8x128xbf16>, vector<128x128xbf16>, vector<8x128xf32> -> vector<8x128xf32>
      %c0_23 = arith.constant 0 : index
      %c0_24 = arith.constant 0 : index
      %28 = vector.load %arg8[%c0_23, %c0_24] : memref<1x128xf32, #tpu.memory_space<vmem>>, vector<1x128xf32>
      %29 = vector.broadcast %28 : vector<1x128xf32> to vector<8x128xf32>
      %30 = arith.addf %27, %29 : vector<8x128xf32>
      %c0_25 = arith.constant 0 : index
      %c0_26 = arith.constant 0 : index
      %31 = vector.load %arg10[%c0_25, %c0_26] : memref<8x128xf32, #tpu.memory_space<vmem>>, vector<8x128xf32>
      tpu.vector_store %arg10[%c0_25, %c0_26], %30 {strides = array<i32>} : memref<8x128xf32, #tpu.memory_space<vmem>>, vector<8x128xf32>,
    } else {
    }
    return
  }
  func.func @transform_0(%arg0: i32, %arg1: i32) -> (i32, i32) {
    %c0_i32 = arith.constant 0 : i32
    return %arg0, %arg1 : i32, i32
  }
  func.func @transform_1(%arg0: i32, %arg1: i32) -> (i32, i32) {
    %c0_i32 = arith.constant 0 : i32
    %c0_i32_0 = arith.constant 0 : i32
    return %arg1, %c0_i32 : i32, i32
  }
  func.func @transform_2(%arg0: i32, %arg1: i32) -> (i32, i32) {
    %c0_i32 = arith.constant 0 : i32
    %c0_i32_0 = arith.constant 0 : i32
    %c0_i32_1 = arith.constant 0 : i32
    return %c0_i32, %c0_i32_0 : i32, i32
  }
  func.func @transform_3(%arg0: i32, %arg1: i32) -> (i32, i32) {
    %c0_i32 = arith.constant 0 : i32
    %c0_i32_0 = arith.constant 0 : i32
    %c0_i32_1 = arith.constant 0 : i32
    return %c0_i32, %c0_i32_0 : i32, i32
  }
  func.func @transform_4(%arg0: i32, %arg1: i32) -> (i32, i32) {
    %c0_i32 = arith.constant 0 : i32
    %c0_i32_0 = arith.constant 0 : i32
    %c0_i32_1 = arith.constant 0 : i32
    return %c0_i32, %c0_i32_0 : i32, i32
  }
  func.func @transform_5(%arg0: i32, %arg1: i32) -> (i32, i32) {
    %c0_i32 = arith.constant 0 : i32
    %c0_i32_0 = arith.constant 0 : i32
    %c0_i32_1 = arith.constant 0 : i32
    return %c0_i32, %c0_i32_0 : i32, i32
  }
  func.func @transform_6(%arg0: i32, %arg1: i32) -> (i32, i32) {
    %c0_i32 = arith.constant 0 : i32
    %c0_i32_0 = arith.constant 0 : i32
    %c0_i32_1 = arith.constant 0 : i32
    return %c0_i32, %c0_i32_0 : i32, i32
  }
  func.func @transform_7(%arg0: i32, %arg1: i32) -> (i32, i32) {
    %c0_i32 = arith.constant 0 : i32
    %c0_i32_0 = arith.constant 0 : i32
    return %arg0, %c0_i32 : i32, i32
  }
  func.func @transform_8(%arg0: i32, %arg1: i32) -> (i32, i32) {
    %c0_i32 = arith.constant 0 : i32
    %c0_i32_0 = arith.constant 0 : i32
    return %arg0, %c0_i32 : i32, i32
  }
}

</mosaic_0001>

<bundles_post_ra>
// kernel: roi_box_head_forward.1
= control target key start
LH: loop header
LB: loop body
LE: loop exit
PB: predicated region body
PF: predicated region fallthrough
CT: control target
= control target key end

     0   :  { %s1113_s27 = smov 0   ;;  %s1115_s28 = smov 0   ;;  %s1243_s0 = inlined_call_operand.vmem [shape: bf16[16,256], index: 0, kind: input, shape index: {}]   ;;  %s1244_s1 = inlined_call_operand.vmem [shape: bf16[256,128], index: 1, kind: input, shape index: {}]   ;;  %s1245_s2 = inlined_call_operand.vmem [shape: f32[1,128], index: 2, kind: input, shape index: {}]   ;;  %s1246_s3 = inlined_call_operand.vmem [shape: bf16[128,128], index: 3, kind: input, shape index: {}]   ;;  %s1247_s4 = inlined_call_operand.vmem [shape: f32[1,128], index: 4, kind: input, shape index: {}]   ;;  %s1248_s5 = inlined_call_operand.vmem [shape: bf16[128,128], index: 5, kind: input, shape index: {}]   ;;  %s1249_s6 = inlined_call_operand.vmem [shape: f32[1,128], index: 6, kind: input, shape index: {}]   ;;  %s1250_s7 = inlined_call_operand.vmem [shape: bf16[16,128], index: 7, kind: output, shape index: {0}]   ;;  %s1251_s8 = inlined_call_operand.vmem [shape: f32[16,128], index: 8, kind: output, shape index: {1}]  }
   0x1   :  { %s1117_s29 = smov 0   ;;  %s1119_s30 = smov 0  }
   0x2   :  { %s1121_s9 = smov 0  }
   0x3 LB: > { %s28_s10 = sadd.s32 1, %s1054_s29  ;;  %s31_s11 = sadd.s32 1, %s1058_s30  ;;  %s1062_s9 = sphi %s1121_s9, %s19_s9   ;;  %s1058_s30 = sphi %s1119_s30, %s1259_s30   ;;  %s1054_s29 = sphi %s1117_s29, %s1258_s29   ;;  %s1050_s28 = sphi %s1115_s28, %s1257_s28   ;;  %s1046_s27 = sphi %s1113_s27, %s1256_s27  }
   0x4   : > { %p29_p0 = scmp.ge.s32.totalorder %s28_s10, 2  ;;  %p831_p1 = scmp.ge.s32.totalorder %s1062_s9, 1 }
   0x5   : > { %p293_p2 = scmp.lt.s32.totalorder %s1062_s9, 5 }
   0x6   : > { %s1261_s10 = smov (%p29_p0, %s28_s10), 0  ;;  %s1263_s11 = smov (!%p29_p0, %s31_s11), %s1058_s30 }
   0x7   : > { %1252 = sst [smem:[#allocation3_spill]] %s1261_s10  ;;  %p294_p3 = pnand %p831_p1, %p293_p2 }
   0x8   : > { %p33_p4 = scmp.ge.s32.totalorder %s1263_s11, 2  ;;  %p338_p5 = scmp.lt.s32.totalorder (!%p294_p3), %s1050_s28, 1 }
   0x9   : > { %297 = sbr.rel (%p294_p3) target bundleno = 690 (0x2b2), region = 48  ;;  %p340_p6 = scmp.lt.s32.totalorder (!%p294_p3), %s1046_s27, 1 }
   0xa   : > { %s1265_s11 = smov (%p33_p4, %s1263_s11), 0  ;;  %s834_s12 = sshll.u32 (!%p294_p3), %s1046_s27, 4 }
   0xb   : > { %1253 = sst [smem:[#allocation4_spill]] %s1265_s11  ;;  %p347_p7 = scmp.lt.s32.totalorder (!%p294_p3), %s834_s12, 31 }
   0xc   : > { %p838_p8 = scmp.ne.s32.totalorder (!%p294_p3), %s1046_s27, 0 }
   0xe   : > { %s1267_s28 = smov (!%p338_p5, %s1050_s28), 1  ;;  %s1269_s12 = smov (!%p347_p7, %s834_s12), 31 }
   0xf   : > { %s341_s13 = scalar_select %p340_p6, %s1046_s27, 1 }
  0x10   : > { %s832_s14 = sshll.u32 %s1267_s28, 1  ;;  %s836_s16 = sshll.u32 %s1267_s28, 2 }
  0x11   : > { %s343_s15 = sadd.s32 %s832_s14, %s341_s13  ;;  %s1151_s20 = scalar_lea.vmem %s1250_s7, %s836_s16 }
  0x12   : > { %s833_s17 = sshll.u32 %s343_s15, 2  ;;  %s837_s24 = sshll.u32 %s1267_s28, 3 }
  0x13   : > { %s1156_s23 = scalar_lea.vmem %s1243_s0, %s833_s17  ;;  %s1161_s11 = scalar_lea.vmem %s1251_s8, %s837_s24 }
  0x14   : > { %s835_s13 = sshll.u32 %s1269_s12, 2  ;;  %364 = sbr.rel (%p838_p8) target bundleno = 27 (0x1b), region = 52 }
  0x15   : > { %s350_s10 = scalar_lea.vmem %s1244_s1, %s835_s13 }
  0x19   : > { %v839_v0 = vld [vmem:[%s1245_s2] ss:$0 sm:$0xff] }
  0x1a   : > { %372 = vst [vmem:[#allocation2] sm:$0xff] %v839_v0 }
  0x1b PF: > { %v1000_v1 = vld [vmem:[%s350_s10 + $0x38] sm:$0xff]   ;;  %v1064_v2 = vmov 0.0   ;;  %v1001_v3 = vld [vmem:[%s350_s10 + $0x30] sm:$0xff]   ;;  %vm1065_vm0 = vmmov 0   ;;  %v1002_v4 = vld [vmem:[%s350_s10 + $0x28] sm:$0xff]   ;;  %p848_p9 = scmp.ne.s32.totalorder %s1046_s27, 1 }
  0x1c   : > { %896 = vmatprep.subr.bf16.mxu0 %v1064_v2  ;;  %912 = vmatprep.mubr.msk.bf16.mxu0 %vm1065_vm0, %v1064_v2  ;;  %v1003_v5 = vld [vmem:[%s350_s10 + $0x20] sm:$0xff]   ;;  %v1004_v6 = vld [vmem:[%s350_s10 + $0x18] sm:$0xff]   ;;  %v1005_v7 = vld [vmem:[%s350_s10 + $0x10] sm:$0xff]  }
  0x1d   : > { %897 = vmatpush3.bf16.msra.mxu0 %v1000_v1  ;;  %v1006_v8 = vld [vmem:[%s350_s10 + $0x8] sm:$0xff]   ;;  %v1007_v9 = vld [vmem:[%s350_s10] sm:$0xff]  }
  0x1e   : > { %898 = vmatprep.subr.bf16.mxu0 %v1064_v2  ;;  %v374_v10 = vld [vmem:[%s1156_s23] sm:$0xf] }
  0x21   : > { %899 = vmatpush3.bf16.msra.mxu0 %v1001_v3  ;;  %v373_v11 = vld [vmem:[#allocation2] sm:$0xff] }
  0x22   : > { %900 = vmatprep.subr.bf16.mxu0 %v1064_v2 }
  0x25   : > { %901 = vmatpush3.bf16.msra.mxu0 %v1002_v4 }
  0x26   : > { %902 = vmatprep.subr.bf16.mxu0 %v1064_v2 }
  0x29   : > { %903 = vmatpush3.bf16.msra.mxu0 %v1003_v5 }
  0x2a   : > { %904 = vmatprep.subr.bf16.mxu0 %v1064_v2 }
  0x2d   : > { %905 = vmatpush3.bf16.msra.mxu0 %v1004_v6 }
  0x2e   : > { %906 = vmatprep.subr.bf16.mxu0 %v1064_v2 }
  0x31   : > { %907 = vmatpush3.bf16.msra.mxu0 %v1005_v7 }
  0x32   : > { %908 = vmatprep.subr.bf16.mxu0 %v1064_v2 }
  0x35   : > { %909 = vmatpush3.bf16.msra.mxu0 %v1006_v8 }
  0x36   : > { %910 = vmatprep.subr.bf16.mxu0 %v1064_v2 }
  0x39   : > { %911 = vmatpush3.bf16.msra.mxu0 %v1007_v9 }
  0x3c   : > { %913 = vmatmul.mubr.bf16.vlgmr.msra.gmra.mxu0 %v374_v10 }
  0xfc   : > { %v473_v12 = vpop.f32.mrf.mxu0 }
  0xfd   : > { %v479_v13 = vadd.f32 %v473_v12, %v373_v11 }
  0xfe   : > { %v914_v14 = vpop.f32.mrf.mxu0  ;;  %484 = sbr.rel (%p848_p9) target bundleno = 690 (0x2b2), region = 56 }
  0xff   : > { %480 = vst [vmem:[#allocation2] sm:$0xff] %v479_v13 }
 0x100   : > { %v476_v15 = vpop.f32.mrf.mxu0 }
 0x102   : > { %v915_v16 = vpop.f32.mrf.mxu0 }
 0x103   : > { %v1008_v17 = vld [vmem:[%s1246_s3 + $0x38] sm:$0xff]   ;;  %v1066_v18 = vmov 0.0   ;;  %v1009_v19 = vld [vmem:[%s1246_s3 + $0x30] sm:$0xff]   ;;  %vm1067_vm1 = vmmov 0   ;;  %v1010_v20 = vld [vmem:[%s1246_s3 + $0x28] sm:$0xff]  }
 0x104   : > { %916 = vmatprep.subr.bf16.mxu0 %v1066_v18  ;;  %936 = vmatprep.subr.bf16.mxu1 %v1066_v18  ;;  %v1016_v21 = vld [vmem:[%s1248_s5 + $0x38] sm:$0xff]   ;;  %v1011_v22 = vld [vmem:[%s1246_s3 + $0x20] sm:$0xff]   ;;  %v1017_v23 = vld [vmem:[%s1248_s5 + $0x30] sm:$0xff]  }
 0x105   : > { %917 = vmatpush3.bf16.msra.mxu0 %v1008_v17  ;;  %932 = vmatprep.mubr.msk.bf16.mxu0 %vm1067_vm1, %v1066_v18  ;;  %v1012_v24 = vld [vmem:[%s1246_s3 + $0x18] sm:$0xff]   ;;  %v1018_v25 = vld [vmem:[%s1248_s5 + $0x28] sm:$0xff]   ;;  %v1013_v26 = vld [vmem:[%s1246_s3 + $0x10] sm:$0xff]  }
 0x106   : > { %918 = vmatprep.subr.bf16.mxu0 %v1066_v18  ;;  %952 = vmatprep.mubr.msk.bf16.mxu1 %vm1067_vm1, %v1066_v18  ;;  %v1019_v27 = vld [vmem:[%s1248_s5 + $0x20] sm:$0xff]   ;;  %v1014_v28 = vld [vmem:[%s1246_s3 + $0x8] sm:$0xff]   ;;  %v1020_v30 = vld [vmem:[%s1248_s5 + $0x18] sm:$0xff]  }
 0x107   : > { %937 = vmatpush3.bf16.msra.mxu1 %v1016_v21  ;;  %v485_v29 = vld [vmem:[#allocation2] sm:$0xff]  ;;  %v1021_v33 = vld [vmem:[%s1248_s5 + $0x10] sm:$0xff]   ;;  %v1022_v35 = vld [vmem:[%s1248_s5 + $0x8] sm:$0xff]  }
 0x108   : > { %938 = vmatprep.subr.bf16.mxu1 %v1066_v18  ;;  %v486_v31 = vmax.f32 %v485_v29, 0.0  ;;  %v1015_v32 = vld [vmem:[%s1246_s3] sm:$0xff]  }
 0x109   : > { %919 = vmatpush3.bf16.msra.mxu0 %v1009_v19  ;;  %v1023_v36 = vld [vmem:[%s1248_s5] sm:$0xff]  }
 0x10a   : > { %920 = vmatprep.subr.bf16.mxu0 %v1066_v18  ;;  %v487_v34 = vpack.c.bf16 %v486_v31, %v486_v31  ;;  %v849_v37 = vld [vmem:[%s1247_s4] ss:$0 sm:$0xff] }
 0x10b   : > { %939 = vmatpush3.bf16.msra.mxu1 %v1017_v23  ;;  %v858_v45 = vld [vmem:[%s1249_s6] ss:$0 sm:$0xff] }
 0x10c   : > { %940 = vmatprep.subr.bf16.mxu1 %v1066_v18 }
 0x10d   : > { %921 = vmatpush3.bf16.msra.mxu0 %v1010_v20 }
 0x10e   : > { %922 = vmatprep.subr.bf16.mxu0 %v1066_v18 }
 0x10f   : > { %941 = vmatpush3.bf16.msra.mxu1 %v1018_v25 }
 0x110   : > { %942 = vmatprep.subr.bf16.mxu1 %v1066_v18 }
 0x111   : > { %923 = vmatpush3.bf16.msra.mxu0 %v1011_v22 }
 0x112   : > { %924 = vmatprep.subr.bf16.mxu0 %v1066_v18 }
 0x113   : > { %943 = vmatpush3.bf16.msra.mxu1 %v1019_v27 }
 0x114   : > { %944 = vmatprep.subr.bf16.mxu1 %v1066_v18 }
 0x115   : > { %925 = vmatpush3.bf16.msra.mxu0 %v1012_v24 }
 0x116   : > { %926 = vmatprep.subr.bf16.mxu0 %v1066_v18 }
 0x117   : > { %945 = vmatpush3.bf16.msra.mxu1 %v1020_v30 }
 0x118   : > { %946 = vmatprep.subr.bf16.mxu1 %v1066_v18 }
 0x119   : > { %927 = vmatpush3.bf16.msra.mxu0 %v1013_v26 }
 0x11a   : > { %928 = vmatprep.subr.bf16.mxu0 %v1066_v18 }
 0x11b   : > { %947 = vmatpush3.bf16.msra.mxu1 %v1021_v33 }
 0x11c   : > { %948 = vmatprep.subr.bf16.mxu1 %v1066_v18 }
 0x11d   : > { %929 = vmatpush3.bf16.msra.mxu0 %v1014_v28 }
 0x11e   : > { %930 = vmatprep.subr.bf16.mxu0 %v1066_v18 }
 0x11f   : > { %949 = vmatpush3.bf16.msra.mxu1 %v1022_v35 }
 0x120   : > { %950 = vmatprep.subr.bf16.mxu1 %v1066_v18 }
 0x121   : > { %931 = vmatpush3.bf16.msra.mxu0 %v1015_v32 }
 0x123   : > { %951 = vmatpush3.bf16.msra.mxu1 %v1023_v36 }
 0x124   : > { %933 = vmatmul.mubr.bf16.vlgmr.msra.gmra.mxu0 %v487_v34 }
 0x1e4   : > { %v593_v38 = vpop.f32.mrf.mxu0 }
 0x1e5   : > { %v594_v39 = vadd.f32 %v849_v37, %v593_v38 }
 0x1e6   : > { %v934_v40 = vpop.f32.mrf.mxu0 }
 0x1e7   : > { %v599_v41 = vmax.f32 %v594_v39, 0.0 }
 0x1e8   : > { %v596_v42 = vpop.f32.mrf.mxu0 }
 0x1e9   : > { %v600_v43 = vpack.c.bf16 %v599_v41, %v599_v41 }
 0x1ea   : > { %v935_v44 = vpop.f32.mrf.mxu0 }
 0x1eb   : > { %601 = vst [vmem:[%s1151_s20] sm:$0xf] %v600_v43  ;;  %953 = vmatmul.mubr.bf16.vlgmr.msra.gmra.mxu1 %v600_v43 }
 0x2ab   : > { %v707_v46 = vpop.f32.mrf.mxu1 }
 0x2ac   : > { %v708_v47 = vadd.f32 %v858_v45, %v707_v46 }
 0x2ad   : > { %v954_v48 = vpop.f32.mrf.mxu1 }
 0x2ae   : > { %713 = vst [vmem:[%s1161_s11] sm:$0xff] %v708_v47 }
 0x2af   : > { %v710_v49 = vpop.f32.mrf.mxu1 }
 0x2b1   : > { %v955_v50 = vpop.f32.mrf.mxu1 }
 0x2b2 PF: > { %s19_s9 = sadd.s32 1, %s1062_s9   ;;  %s1254_s10 = sld [smem:[#allocation3_spill]] }
 0x2b3   : > { %p16_p10 = scmp.ge.s32.totalorder %s19_s9, 6   ;;  %s1255_s20 = sld [smem:[#allocation4_spill]] }
 0x2b4   : > { %s1256_s27 = smov %s1054_s29  ;;  %s1257_s28 = smov %s1058_s30 }
 0x2b5   :  { %18 = sbr.rel (!%p16_p10) target bundleno = 3 (0x3), region = 101 }
 0x2b8   : > { %s1258_s29 = smov %s1254_s10 }
 0x2b9   : > { %s1259_s30 = smov %s1255_s20 }

</bundles_post_ra>
